<compile_context>
chip_gen: v7x
topology: tpu7x:2x2x1
jax: 0.10.0
libtpu: 0.0.40
codegen_flags: <defaults>
</compile_context>

<pallas_src>
import functools

import jax
import jax.numpy as jnp
from jax import lax
from jax.experimental import pallas as pl
from jax.experimental.pallas import tpu as pltpu


def _convffn_kernel(x_ref, w1_ref, b1_ref, w2_ref, b2_ref, o_ref, *, slope):
    # x_ref : (C, tl)    lane-dense token tile (tl = spatial columns)
    # w1_ref: (Hid, C)   conv1 weight in PyTorch (out, in) layout
    # b1_ref: (Hid, 1)
    # w2_ref: (C, Hid)   conv2 weight in PyTorch (out, in) layout
    # b2_ref: (C, 1)
    # o_ref : (C, tl)
    x = x_ref[...].astype(jnp.float32)

    # 1x1 conv #1 (channel matmul, spatial axis stays on lanes) + LeakyReLU
    h = jnp.dot(w1_ref[...], x, preferred_element_type=jnp.float32) + b1_ref[...]
    h = jnp.where(h >= 0, h, slope * h)

    # 1x1 conv #2 + LeakyReLU
    y = jnp.dot(w2_ref[...], h, preferred_element_type=jnp.float32) + b2_ref[...]
    y = jnp.where(y >= 0, y, slope * y)

    # residual add, lane-dense store
    o_ref[...] = (x + y).astype(o_ref.dtype)


def _choose_tile_l(L, C, Hid, n_batch, vmem_tile_budget=16 * 1024 * 1024):
    """Largest lane-tile (multiple of 128, divisor of L) that fits the budget."""
    # per-column f32 bytes: x & out tiles double-buffered (4*C), residual/cast
    # copies (~2*C), hidden activation h (2*Hid, generous).
    per_col = 4 * (4 * C + 2 * C + 2 * Hid)
    max_cols = max(128, (vmem_tile_budget // per_col) // 128 * 128)
    target = min(max_cols, 8192, L)
    if n_batch == 1 and L >= 256:
        # keep >= 2 grid steps so both v7x TensorCores have work
        target = min(target, max(128, (L // 2) // 128 * 128))
    best = None
    cand = 128
    while cand <= target:
        if L % cand == 0:
            best = cand
        cand += 128
    if best is None:
        # no 128-multiple divides L: use the full extent (allowed: equals array dim)
        best = L
    return best


def conv_ffn_pallas(x_nchw, w1, b1, w2, b2, *, slope=0.1, tile_l=None):
    """ConvFFN forward: x + LeakyReLU(Conv1x1(LeakyReLU(Conv1x1(x)))).

    x_nchw: (N, C, H, W)
    w1: (Hid, C)  -- PyTorch Conv2d weight (out, in) with the 1x1 dims squeezed
    b1: (Hid,)
    w2: (C, Hid)
    b2: (C,)
    """
    N, C, H, W = x_nchw.shape
    Hid = w1.shape[0]
    L = H * W

    # NCHW -> (N, C, L): pure reshape, no transpose, no pad, no trailing slice.
    x3 = x_nchw.reshape(N, C, L)
    b1c = b1.reshape(Hid, 1)
    b2c = b2.reshape(C, 1)

    if tile_l is None:
        tile_l = _choose_tile_l(L, C, Hid, N)
    if L % tile_l != 0:
        tile_l = L
    grid = (N, L // tile_l)

    kernel = functools.partial(_convffn_kernel, slope=float(slope))

    itemsize = jnp.dtype(x_nchw.dtype).itemsize
    cost = pl.CostEstimate(
        flops=4 * N * L * C * Hid,  # two matmuls, 2*M*K*N each
        transcendentals=0,
        bytes_accessed=2 * N * C * L * itemsize
        + (w1.size + w2.size + b1.size + b2.size) * 4,
    )

    out3 = pl.pallas_call(
        kernel,
        out_shape=jax.ShapeDtypeStruct((N, C, L), x_nchw.dtype),
        grid_spec=pltpu.PrefetchScalarGridSpec(
            num_scalar_prefetch=0,
            grid=grid,
            in_specs=[
                pl.BlockSpec((None, C, tile_l), lambda n, l: (n, 0, l)),  # x tile
                pl.BlockSpec((Hid, C), lambda n, l: (0, 0)),              # w1 (resident)
                pl.BlockSpec((Hid, 1), lambda n, l: (0, 0)),              # b1
                pl.BlockSpec((C, Hid), lambda n, l: (0, 0)),              # w2 (resident)
                pl.BlockSpec((C, 1), lambda n, l: (0, 0)),                # b2
            ],
            out_specs=pl.BlockSpec((None, C, tile_l), lambda n, l: (n, 0, l)),
        ),
        compiler_params=pltpu.CompilerParams(
            dimension_semantics=("parallel", "parallel"),
            vmem_limit_bytes=32 * 1024 * 1024,
        ),
        cost_estimate=cost,
    )(x3, w1, b1c, w2, b2c)

    return out3.reshape(N, C, H, W)


def conv_ffn_reference(x_nchw, w1, b1, w2, b2, slope=0.1):
    """Pure-JAX reference mirroring the PyTorch forward (full f32 precision)."""
    N, C, H, W = x_nchw.shape
    x3 = x_nchw.reshape(N, C, H * W).astype(jnp.float32)
    h = jnp.einsum("oc,ncl->nol", w1, x3, precision=lax.Precision.HIGHEST)
    h = h + b1[None, :, None]
    h = jnp.where(h >= 0, h, slope * h)
    y = jnp.einsum("co,nol->ncl", w2, h, precision=lax.Precision.HIGHEST)
    y = y + b2[None, :, None]
    y = jnp.where(y >= 0, y, slope * y)
    return (x3 + y).reshape(N, C, H, W).astype(x_nchw.dtype)


if __name__ == "__main__":
    key = jax.random.PRNGKey(0)
    N, C, H, W = 2, 4, 16, 16
    internal_ch = max(min(C * 4, 1024), C * 2)  # == 16 for C=4
    slope = 0.1

    k_x, k_w1, k_b1, k_w2, k_b2 = jax.random.split(key, 5)
    x = jax.random.normal(k_x, (N, C, H, W), dtype=jnp.float32)

    # Parameters in PyTorch Conv2d (out, in) convention (1x1 dims squeezed).
    w1 = jax.random.normal(k_w1, (internal_ch, C), dtype=jnp.float32) * 0.1
    b1 = jax.random.normal(k_b1, (internal_ch,), dtype=jnp.float32) * 0.1
    w2 = jax.random.normal(k_w2, (C, internal_ch), dtype=jnp.float32) * 0.1
    b2 = jax.random.normal(k_b2, (C,), dtype=jnp.float32) * 0.1

    out = conv_ffn_pallas(x, w1, b1, w2, b2, slope=slope)
    out = jax.block_until_ready(out)

    ref = conv_ffn_reference(x, w1, b1, w2, b2, slope=slope)
    assert out.shape == (N, C, H, W), out.shape
    assert jnp.allclose(out, ref, atol=1e-5, rtol=1e-5), float(
        jnp.max(jnp.abs(out - ref))
    )
    print("KERNEL_OK")
</pallas_src>

<mosaic_0001>
module attributes {stable_mosaic.version = 11 : i64} {
  func.func @_convffn_kernel(%arg0: i32, %arg1: i32, %arg2: memref<1x4x256xf32, #tpu.memory_space<vmem>>, %arg3: memref<16x4xf32, #tpu.memory_space<vmem>>, %arg4: memref<16x1xf32, #tpu.memory_space<vmem>>, %arg5: memref<4x16xf32, #tpu.memory_space<vmem>>, %arg6: memref<4x1xf32, #tpu.memory_space<vmem>>, %arg7: memref<1x4x256xf32, #tpu.memory_space<vmem>>) attributes {dimension_semantics = [#tpu.dimension_semantics<parallel>, #tpu.dimension_semantics<parallel>], iteration_bounds = array<i64: 2, 1>, scalar_prefetch = 0 : i64, scratch_operands = 0 : i64, tpu.core_type = #tpu.core_type<tc>, window_params = [{transform_indices = @transform_0, window_bounds = array<i64: 1, 4, 256>}, {pipeline_mode = #tpu.pipeline_mode<synchronous>, transform_indices = @transform_1, window_bounds = array<i64: 16, 4>}, {pipeline_mode = #tpu.pipeline_mode<synchronous>, transform_indices = @transform_2, window_bounds = array<i64: 16, 1>}, {pipeline_mode = #tpu.pipeline_mode<synchronous>, transform_indices = @transform_3, window_bounds = array<i64: 4, 16>}, {pipeline_mode = #tpu.pipeline_mode<synchronous>, transform_indices = @transform_4, window_bounds = array<i64: 4, 1>}, {transform_indices = @transform_5, window_bounds = array<i64: 1, 4, 256>}]} {
    %c0 = arith.constant 0 : index
    %c0_0 = arith.constant 0 : index
    %c0_1 = arith.constant 0 : index
    %0 = vector.load %arg2[%c0, %c0_0, %c0_1] : memref<1x4x256xf32, #tpu.memory_space<vmem>>, vector<1x4x256xf32>
    %1 = vector.shape_cast %0 : vector<1x4x256xf32> to vector<4x256xf32>
    %c0_2 = arith.constant 0 : index
    %c0_3 = arith.constant 0 : index
    %2 = vector.load %arg3[%c0_2, %c0_3] : memref<16x4xf32, #tpu.memory_space<vmem>>, vector<16x4xf32>
    %cst = arith.constant dense<0.000000e+00> : vector<16x256xf32>
    %3 = tpu.matmul %2, %1, %cst {dimension_numbers = #tpu.dot_dimension_numbers<[1], [0], [0], [1], [0, 0, 1, 1], [], []>} : vector<16x4xf32>, vector<4x256xf32>, vector<16x256xf32> -> vector<16x256xf32>
    %c0_4 = arith.constant 0 : index
    %c0_5 = arith.constant 0 : index
    %4 = vector.load %arg4[%c0_4, %c0_5] : memref<16x1xf32, #tpu.memory_space<vmem>>, vector<16x1xf32>
    %5 = vector.broadcast %4 : vector<16x1xf32> to vector<16x256xf32>
    %6 = arith.addf %3, %5 : vector<16x256xf32>
    %cst_6 = arith.constant 0.000000e+00 : f32
    %7 = vector.broadcast %cst_6 : f32 to vector<16x256xf32>
    %8 = arith.cmpf oge, %6, %7 : vector<16x256xf32>
    %cst_7 = arith.constant 1.000000e-01 : f32
    %9 = vector.broadcast %cst_7 : f32 to vector<16x256xf32>
    %10 = arith.mulf %9, %6 : vector<16x256xf32>
    %11 = arith.select %8, %6, %10 : vector<16x256xi1>, vector<16x256xf32>
    %c0_8 = arith.constant 0 : index
    %c0_9 = arith.constant 0 : index
    %12 = vector.load %arg5[%c0_8, %c0_9] : memref<4x16xf32, #tpu.memory_space<vmem>>, vector<4x16xf32>
    %cst_10 = arith.constant dense<0.000000e+00> : vector<4x256xf32>
    %13 = tpu.matmul %12, %11, %cst_10 {dimension_numbers = #tpu.dot_dimension_numbers<[1], [0], [0], [1], [0, 0, 1, 1], [], []>} : vector<4x16xf32>, vector<16x256xf32>, vector<4x256xf32> -> vector<4x256xf32>
    %c0_11 = arith.constant 0 : index
    %c0_12 = arith.constant 0 : index
    %14 = vector.load %arg6[%c0_11, %c0_12] : memref<4x1xf32, #tpu.memory_space<vmem>>, vector<4x1xf32>
    %15 = vector.broadcast %14 : vector<4x1xf32> to vector<4x256xf32>
    %16 = arith.addf %13, %15 : vector<4x256xf32>
    %cst_13 = arith.constant 0.000000e+00 : f32
    %17 = vector.broadcast %cst_13 : f32 to vector<4x256xf32>
    %18 = arith.cmpf oge, %16, %17 : vector<4x256xf32>
    %cst_14 = arith.constant 1.000000e-01 : f32
    %19 = vector.broadcast %cst_14 : f32 to vector<4x256xf32>
    %20 = arith.mulf %19, %16 : vector<4x256xf32>
    %21 = arith.select %18, %16, %20 : vector<4x256xi1>, vector<4x256xf32>
    %22 = arith.addf %1, %21 : vector<4x256xf32>
    %c0_15 = arith.constant 0 : index
    %c0_16 = arith.constant 0 : index
    %c0_17 = arith.constant 0 : index
    %23 = vector.load %arg7[%c0_15, %c0_16, %c0_17] : memref<1x4x256xf32, #tpu.memory_space<vmem>>, vector<1x4x256xf32>
    %24 = vector.shape_cast %23 : vector<1x4x256xf32> to vector<4x256xf32>
    %25 = vector.shape_cast %22 : vector<4x256xf32> to vector<1x4x256xf32>
    tpu.vector_store %arg7[%c0_15, %c0_16, %c0_17], %25 {strides = array<i32>} : memref<1x4x256xf32, #tpu.memory_space<vmem>>, vector<1x4x256xf32>,
    return
  }
  func.func @transform_0(%arg0: i32, %arg1: i32) -> (i32, i32, i32) {
    %c0_i32 = arith.constant 0 : i32
    %c0_i32_0 = arith.constant 0 : i32
    return %arg0, %c0_i32, %arg1 : i32, i32, i32
  }
  func.func @transform_1(%arg0: i32, %arg1: i32) -> (i32, i32) {
    %c0_i32 = arith.constant 0 : i32
    %c0_i32_0 = arith.constant 0 : i32
    %c0_i32_1 = arith.constant 0 : i32
    return %c0_i32, %c0_i32_0 : i32, i32
  }
  func.func @transform_2(%arg0: i32, %arg1: i32) -> (i32, i32) {
    %c0_i32 = arith.constant 0 : i32
    %c0_i32_0 = arith.constant 0 : i32
    %c0_i32_1 = arith.constant 0 : i32
    return %c0_i32, %c0_i32_0 : i32, i32
  }
  func.func @transform_3(%arg0: i32, %arg1: i32) -> (i32, i32) {
    %c0_i32 = arith.constant 0 : i32
    %c0_i32_0 = arith.constant 0 : i32
    %c0_i32_1 = arith.constant 0 : i32
    return %c0_i32, %c0_i32_0 : i32, i32
  }
  func.func @transform_4(%arg0: i32, %arg1: i32) -> (i32, i32) {
    %c0_i32 = arith.constant 0 : i32
    %c0_i32_0 = arith.constant 0 : i32
    %c0_i32_1 = arith.constant 0 : i32
    return %c0_i32, %c0_i32_0 : i32, i32
  }
  func.func @transform_5(%arg0: i32, %arg1: i32) -> (i32, i32, i32) {
    %c0_i32 = arith.constant 0 : i32
    %c0_i32_0 = arith.constant 0 : i32
    return %arg0, %c0_i32, %arg1 : i32, i32, i32
  }
}

</mosaic_0001>

<bundles_post_ra>
// kernel: tpu_custom_call.1
= control target key start
LH: loop header
LB: loop body
LE: loop exit
PB: predicated region body
PF: predicated region fallthrough
CT: control target
= control target key end

     0   :  { %10 = vsyncpa [#allocation3], 0  ;;  %s886_s0 = inlined_call_operand.vmem [shape: f32[2,4,256], index: 0, kind: input, shape index: {}]   ;;  %s887_s1 = inlined_call_operand.vmem [shape: f32[16,4], index: 1, kind: input, shape index: {}]   ;;  %s888_s2 = inlined_call_operand.vmem [shape: f32[16,1], index: 2, kind: input, shape index: {}]   ;;  %s889_s3 = inlined_call_operand.vmem [shape: f32[4,16], index: 3, kind: input, shape index: {}]   ;;  %s890_s4 = inlined_call_operand.vmem [shape: f32[4,1], index: 4, kind: input, shape index: {}]   ;;  %s891_s5 = inlined_call_operand.hbm [shape: f32[2,4,256], index: 5, kind: output, shape index: {}]  }
   0x1   :  { %12 = vsyncpa [#allocation3 + $0x1], 0  ;;  %s756_s18 = smov 0   ;;  %s758_s19 = smov 0  }
   0x2   :  { %s760_s20 = smov 0   ;;  %s762_s21 = smov 0  }
   0x3   :  { %s764_s22 = smov 0   ;;  %s766_s23 = smov 0  }
   0x4 LB: > { %s559_s24 = sadd.s32 4294967295, %s721_s23   ;;  %s560_s25 = sadd.s32 4294967294, %s721_s23   ;;  %s721_s23 = sphi %s766_s23, %s18_s23   ;;  %s717_s22 = sphi %s764_s22, %s898_s22   ;;  %s713_s21 = sphi %s762_s21, %s897_s21   ;;  %s709_s20 = sphi %s760_s20, %s896_s20   ;;  %s705_s19 = sphi %s758_s19, %s895_s19   ;;  %s701_s18 = sphi %s756_s18, %s894_s18  }
   0x5   : > { %s30_s26 = sadd.s32 1, %s717_s22  ;;  %s151_s27 = sadd.s32 1, %s709_s20 }
   0x6   : > { %p32_p0 = scmp.ge.s32.totalorder %s30_s26, 2  ;;  %p161_p1 = scmp.ne.s32.totalorder %s709_s20, %s705_s19 }
   0x7   : > { %p162_p2 = scmp.eq.s32.totalorder %s559_s24, 1  ;;  %p167_p3 = scmp.ne.s32.totalorder %s705_s19, %s701_s18 }
   0x8   : > { %s900_s26 = smov (%p32_p0, %s30_s26), 0  ;;  %p168_p5 = scmp.eq.s32.totalorder %s560_s25, 1 }
   0x9   : > { %p796_p4 = por %p162_p2, %p161_p1  ;;  %s146_s29 = ssub.s32 %s717_s22, %s900_s26 }
   0xa   : > { %p563_p6 = scmp.ge.s32.totalorder %s721_s23, 1  ;;  %p149_p7 = scmp.eq.s32.totalorder %s146_s29, 0 }
   0xb   : > { %p803_p8 = por %p168_p5, %p167_p3  ;;  %p211_p9 = scmp.lt.s32.totalorder %s721_s23, 3 }
   0xc   : > { %s809_s6 = scalar_select %p149_p7, %s709_s20, %s151_s27  }
   0xd   : > { %p212_p10 = pnand %p563_p6, %p211_p9 }
   0xe   : > { %p244_p11 = scmp.lt.s32.totalorder (!%p212_p10), %s713_s21, 1  ;;  %v723_v0 = vmov (!%p212_p10), 0.0   ;;  %v257_v1 = vld [vmem:[%s888_s2] sm:$0xff] (!%p212_p10)  ;;  %v724_v2 = vmov (!%p212_p10), 0   ;;  %v258_v3 = vld [vmem:[%s888_s2 + $0x8] sm:$0xff] (!%p212_p10)  ;;  %vm278_vm0 = vcmask (!%p212_p10), 1043456  }
   0xf   : > { %215 = sbr.rel (%p212_p10) target bundleno = 495 (0x1ef), region = 40  ;;  %347 = vmatprep.mubr.f32.mxu0 (!%p212_p10), %v723_v0  ;;  %447 = vmatprep.mubr.f32.mxu1 (!%p212_p10), %v723_v0  ;;  %v255_v6 = vld [vmem:[%s887_s1] sm:$0xff] (!%p212_p10)  ;;  %vm271_vm1 = vcmask (!%p212_p10), 31744   ;;  %v256_v7 = vld [vmem:[%s887_s1 + $0x8] sm:$0xff] (!%p212_p10)  ;;  %vm379_vm6 = vcmask (!%p212_p10), 130048   ;;  %s578_s11 = sshll.u32 (!%p212_p10), %s713_s21, 7 }
  0x10   : > { %640 = vset.pattern.permute.xlu0 (!%p212_p10), %v724_v2  ;;  %641 = vset.pattern.permute.xlu1 (!%p212_p10), %v724_v2  ;;  %v373_v8 = vld [vmem:[%s890_s4] sm:$0xf] (!%p212_p10)  ;;  %s839_s16 = scalar_lea.hbm (!%p212_p10), %s891_s5, %s578_s11 }
  0x11   : > { %261 = vperm.xlu0 (!%p212_p10), %640, %v257_v1   ;;  %376 = vperm.xlu1 (!%p212_p10), %641, %v373_v8   ;;  %v372_v29 = vld [vmem:[%s889_s3] sm:$0xf] (!%p212_p10) }
  0x15   : > { %266 = vperm.xlu0 (!%p212_p10), %640, %v258_v3  }
  0x16   : > { %s245_s9 = scalar_select %p244_p11, %s713_s21, 1 }
  0x17   : > { %s725_s21 = smov [#allocation2]  }
  0x18   : > { %s577_s10 = sshll.u32 %s245_s9, 3  ;;  %s240_s9 = sand.u32 1, %s705_s19  }
  0x19   : > { %s251_s15 = scalar_lea.vmem %s886_s0, %s577_s10  ;;  %s564_s10 = sshll.u32 %s240_s9, 3 }
  0x1a   : > { %v254_v4 = vld [vmem:[%s251_s15] sm:$0xff]  ;;  %s242_s12 = scalar_lea.vmem [#allocation2], %s564_s10  ;;  %s467_s17 = scalar_lea.sflag [#allocation3], %s240_s9 }
  0x1b   : > { %v270_v5 = vcombine.high %v254_v4, %v254_v4  ;;  %s483_s13 = sshll.u32 %s242_s12, 4  ;;  %s647_s25 = sshll.u32 %s725_s21, 4  ;;  %s841_s13 = int_to_ptr.vmem [resolvable:$true] %s483_s13  ;;  %s648_s25 = int_to_ptr.vmem [resolvable:$false] %s647_s25 }
  0x1c   : > { %s643_s24 = scalar_lea.vmem %s841_s13, 128  ;;  %s649_s27 = scalar_lea.vmem %s648_s25, 256 }
  0x1d   : > { %567 = vmatprep.subr.msk.mxu0 %vm278_vm0, %v270_v5  ;;  %p644_p12 = scmp.ne.s32.totalorder %s841_s13, %s643_s24  ;;  %p650_p1 = scmp.lt.s32.totalorder %s841_s13, %s648_s25 }
  0x1e   : > { %568 = vmatpush1.msk.msra.mxu0 %vm278_vm0, %v254_v4  ;;  %p651_p2 = scmp.lt.s32.totalorder %s649_s27, %s643_s24 }
  0x1f   : > { %569 = vmatmul.mubr.msk.f32.vlgmr.msra.gmra.mrb[0].mxu0 %vm271_vm1, %v255_v6  ;;  %p645_p13 = pnand %p644_p12, %p796_p4 }
  0x20   : > { %353 = vmatprep.mubr.f32.mxu0 %v723_v0  ;;  %p652_p3 = por %p651_p2, %p650_p1 }
  0x21   : > { %p646_p0 = pneg %p645_p13 }
  0x23   : > { %570 = vmatmul.mubr.msk.f32.gmra.mrb[2].mxu0 %vm271_vm1, %v256_v7  ;;  %p653_p5 = pnand %p652_p3, %p646_p0 }
  0x90   : > { %v262_v9 = vpop.permute.xlu0 %261  ;;  %v377_v30 = vpop.permute.xlu1 %376 }
  0x94   : > { %v267_v14 = vpop.permute.xlu0 %266 }
  0xf2   : > { %v349_v10 = vpop.f32.mrb[0].mxu0 }
  0xf3   : > { %v350_v11 = vadd.f32 %v349_v10, %v262_v9  ;;  %v351_v12 = vpop.f32.mrb[1].mxu0 }
  0xf4   : > { %v352_v13 = vadd.f32 %v351_v12, %v262_v9 }
  0xf5   : > { %v364_v16 = vmul.f32 0.1, %v350_v11  ;;  %vm360_vm2 = vcmp.ge.f32.partialorder %v350_v11, 0.0 }
  0xf6   : > { %v355_v15 = vpop.f32.mrb[2].mxu0  ;;  %v365_v19 = vmul.f32 0.1, %v352_v13  ;;  %vm361_vm3 = vcmp.ge.f32.partialorder %v352_v13, 0.0 }
  0xf7   : > { %v356_v17 = vadd.f32 %v355_v15, %v267_v14  ;;  %v357_v18 = vpop.f32.mrb[3].mxu0  ;;  %v368_v23 = vsel %vm360_vm2, %v350_v11, %v364_v16 }
  0xf8   : > { %v358_v20 = vadd.f32 %v357_v18, %v267_v14  ;;  %v369_v25 = vsel %vm361_vm3, %v352_v13, %v365_v19 }
  0xf9   : > { %v366_v21 = vmul.f32 0.1, %v356_v17  ;;  %vm362_vm4 = vcmp.ge.f32.partialorder %v356_v17, 0.0 }
  0xfa   : > { %v367_v22 = vmul.f32 0.1, %v358_v20  ;;  %vm363_vm5 = vcmp.ge.f32.partialorder %v358_v20, 0.0 }
  0xfb   : > { %v370_v24 = vsel %vm362_vm4, %v356_v17, %v366_v21 }
  0xfc   : > { %v371_v26 = vsel %vm363_vm5, %v358_v20, %v367_v22  ;;  %v581_v27 = vpack.c.bf16 %v370_v24, %v368_v23 }
  0xfd   : > { %v579_v28 = vpack.c.bf16 %v371_v26, %v369_v25 }
  0xff   : > { %580 = vmatprep.subr.bf16.mxu1 %v579_v28 }
 0x100   : > { %582 = vmatpush1.bf16.msra.mxu1 %v581_v27 }
 0x103   : > { %571 = vmatmul.mubr.msk.f32.vlgmr.msra.gmra.mrb[0].mxu1 %vm379_vm6, %v372_v29 }
 0x1d6   : > { %v449_v31 = vpop.f32.mrb[0].mxu1 }
 0x1d7   : > { %v450_v32 = vadd.f32 %v449_v31, %v377_v30  ;;  %v451_v33 = vpop.f32.mrb[1].mxu1 }
 0x1d8   : > { %v452_v34 = vadd.f32 %v451_v33, %v377_v30 }
 0x1d9   : > { %vm454_vm7 = vcmp.ge.f32.partialorder %v450_v32, 0.0  ;;  %v456_v35 = vmul.f32 0.1, %v450_v32 }
 0x1da   : > { %vm455_vm8 = vcmp.ge.f32.partialorder %v452_v34, 0.0  ;;  %v457_v36 = vmul.f32 0.1, %v452_v34 }
 0x1db   : > { %v458_v37 = vsel %vm454_vm7, %v450_v32, %v456_v35 }
 0x1dc   : > { %v459_v38 = vsel %vm455_vm8, %v452_v34, %v457_v36 }
 0x1dd   : > { %v462_v39 = vcombine.low %v458_v37, %v459_v38 }
 0x1df   : > { %v464_v40 = vadd.f32 %v462_v39, %v254_v4 }
 0x1e1   : > { %465 = vst [vmem:[%s242_s12] sm:$0xff] %v464_v40 }
 0x1e2   : > { %656 = shalt.err (!%p653_p5)
}
 0x1e3   : > { %s657_s29 = scalar_lea.hbm %s839_s16, 128  ;;  %s661_s9 = scalar_lea.hbm %s891_s5, 256 }
 0x1e4   : > { %p658_p6 = scmp.ne.s32.totalorder %s839_s16, %s657_s29  ;;  %p662_p10 = scmp.lt.u32.totalorder %s839_s16, %s891_s5 }
 0x1e5   : > { %p663_p11 = scmp.lt.u32.totalorder %s661_s9, %s657_s29  ;;  %p665_p13 = scmp.lt.u32.totalorder %s657_s29, %s839_s16 }
 0x1e6   : > { %p659_p7 = pnand %p658_p6, %p796_p4 }
 0x1e7   : > { %p664_p12 = por %p663_p11, %p662_p10 }
 0x1e8   : > { %p660_p9 = pneg %p659_p7 }
 0x1e9   : > { %p666_p0 = por %p665_p13, %p664_p12 }
 0x1eb   : > { %p667_p1 = pnand %p666_p0, %p660_p9 }
 0x1ed   : > { %670 = shalt.err (!%p667_p1)
}
 0x1ee   : > { %583 = dma.vmem_to_hbm [thread:$0]  (%p796_p4), %s841_s13, 128, %s839_s16, %s467_s17  }
 0x1ef PF: > { %p589_p2 = scmp.ge.s32.totalorder %s721_s23, 2  ;;  %s495_s12 = sand.u32 1, %s701_s18  }
 0x1f0   : > { %s496_s14 = scalar_lea.sflag [#allocation3], %s495_s12 }
 0x1f1   : > { %p586_p3 = pnand %p589_p2, %p803_p8 }
 0x1f3   : > { %696 = dma.done.wait (!%p586_p3), %s496_s14, 128  }
 0x1f4   : > { %698 = vsyncadd (!%p586_p3), %s496_s14, 4294967168  ;;  %s18_s23 = sadd.s32 1, %s721_s23   ;;  %s894_s18 = smov %s705_s19 }
 0x1f5   : > { %p15_p5 = scmp.ge.s32.totalorder %s18_s23, 4   ;;  %s895_s19 = smov %s709_s20 }
 0x1f6   : > { %s896_s20 = smov %s809_s6  ;;  %s897_s21 = smov %s717_s22 }
 0x1f7   : > { %s898_s22 = smov %s900_s26  ;;  %17 = sbr.rel (!%p15_p5) target bundleno = 4 (0x4), region = 75 }
 0x1fe   :  { %501 = vsyncpa [#allocation3], 1 }
 0x1ff   :  { %503 = vsyncpa [#allocation3 + $0x1], 1 }

</bundles_post_ra>
